<compile_context>
chip_gen: v7x
topology: tpu7x:2x2x1
jax: 0.10.0
libtpu: 0.0.40
codegen_flags: <defaults>
</compile_context>

<pallas_src>
import jax
import jax.numpy as jnp
from jax import lax
from jax.experimental import pallas as pl
from jax.experimental.pallas import tpu as pltpu

C_IN, H, W = 3, 6, 6
KH, KW = 3, 3
H_OUT, W_OUT = H - KH + 1, W - KW + 1
N_FEAT = C_IN * H * W          # 108 flattened input features per sample
N_OUT = H_OUT * W_OUT          # 16 conv outputs per sample
EPS = 1e-5
TB_MAX = 1024                  # samples per grid step (review: 512-2048)


def conv_bn_kernel(b_ref, g_ref, bt_ref, x_ref, w_ref, o_ref):
    # b_ref  (SMEM, (1,)) : conv bias
    # g_ref  (SMEM, (1,)) : BN gamma
    # bt_ref (SMEM, (1,)) : BN beta
    # x_ref  (VMEM, (TB, 108)) : one flattened NCHW sample per sublane row
    # w_ref  (VMEM, (108, 16)) : conv as a dense matrix (sparse im2col weights)
    # o_ref  (VMEM, (TB, 16))
    s = jnp.dot(x_ref[...], w_ref[...],
                precision=lax.Precision.HIGHEST,
                preferred_element_type=jnp.float32)          # MXU
    s = s + b_ref[0]

    # Per-sample training-mode BatchNorm over the 16 outputs of each sample.
    inv_n = 1.0 / N_OUT
    mean = jnp.sum(s, axis=1, keepdims=True) * inv_n          # (TB, 1)
    d = s - mean
    var = jnp.sum(d * d, axis=1, keepdims=True) * inv_n       # two-pass var
    o_ref[...] = g_ref[0] * d * lax.rsqrt(var + EPS) + bt_ref[0]


def _build_wmat(conv_w):
    """(1, C, 3, 3) conv weight -> (108, 16) dense matrix: out = X @ Wmat."""
    w = conv_w.reshape(C_IN, KH, KW).astype(jnp.float32)
    cols = []
    for oh in range(H_OUT):
        for ow in range(W_OUT):
            col = jnp.zeros((C_IN, H, W), jnp.float32)
            col = col.at[:, oh:oh + KH, ow:ow + KW].set(w)
            cols.append(col.reshape(-1))
    return jnp.stack(cols, axis=1)                             # (108, 16)


def _cdiv(a, b):
    return -(-a // b)


def _tile(B):
    """Pick (tile, padded_B): big tiles, >=2 grid steps when possible (v7x)."""
    if B <= 8:
        return B, B                       # single exact block, no padding
    nsteps = max(2, _cdiv(B, TB_MAX))
    tb = ((_cdiv(B, nsteps) + 7) // 8) * 8      # sublane-align
    bp = _cdiv(B, tb) * tb
    return tb, bp


@jax.jit
def conv_bn_forward(x, conv_w, conv_b, gamma, beta):
    """x: (B, 3, 6, 6) NCHW. Each sample == one independent module forward."""
    B = x.shape[0]
    tb, bp = _tile(B)

    # Free reshape of the contiguous NCHW input -> (B, 108); batch on sublanes.
    xf = x.astype(jnp.float32).reshape(B, N_FEAT)
    if bp != B:
        # TODO(synk): ragged tails use a (tiny) host-side pad; could be moved
        # in-kernel with a masked index_map if it ever matters.
        xf = jnp.pad(xf, ((0, bp - B), (0, 0)))

    wmat = _build_wmat(conv_w)

    out = pl.pallas_call(
        conv_bn_kernel,
        out_shape=jax.ShapeDtypeStruct((bp, N_OUT), jnp.float32),
        grid=(bp // tb,),
        in_specs=[
            pl.BlockSpec(memory_space=pltpu.MemorySpace.SMEM),   # conv bias
            pl.BlockSpec(memory_space=pltpu.MemorySpace.SMEM),   # gamma
            pl.BlockSpec(memory_space=pltpu.MemorySpace.SMEM),   # beta
            pl.BlockSpec((tb, N_FEAT), lambda i: (i, 0)),        # X block
            pl.BlockSpec((N_FEAT, N_OUT), lambda i: (0, 0)),     # Wmat (small)
        ],
        out_specs=pl.BlockSpec((tb, N_OUT), lambda i: (i, 0)),
        compiler_params=pltpu.CompilerParams(
            dimension_semantics=("parallel",)),
    )(conv_b.astype(jnp.float32),
      gamma.astype(jnp.float32),
      beta.astype(jnp.float32),
      xf, wmat)

    return out[:B].reshape(B, 1, H_OUT, W_OUT)


def reference(x, conv_w, conv_b, gamma, beta):
    # Per-sample conv + training-mode BN (each sample = one module call, N=1).
    s = lax.conv_general_dilated(
        x.astype(jnp.float32), conv_w.astype(jnp.float32),
        window_strides=(1, 1), padding="VALID",
        dimension_numbers=("NCHW", "OIHW", "NCHW"),
        precision=lax.Precision.HIGHEST)
    s = s + conv_b.reshape(1, -1, 1, 1)
    mean = jnp.mean(s, axis=(2, 3), keepdims=True)
    var = jnp.mean((s - mean) ** 2, axis=(2, 3), keepdims=True)
    return (gamma.reshape(1, -1, 1, 1) * (s - mean) * lax.rsqrt(var + EPS)
            + beta.reshape(1, -1, 1, 1))


if __name__ == "__main__":
    key = jax.random.PRNGKey(0)
    k_x, k_xb, k_w, k_b = jax.random.split(key, 4)

    # Original module input (one sample) ...
    x1 = jax.random.normal(k_x, (1, C_IN, H, W), dtype=jnp.float32)
    # ... plus a batch of independent samples amortized into one pallas_call.
    xb = jax.random.normal(k_xb, (256, C_IN, H, W), dtype=jnp.float32)

    # Deterministic parameter init (Conv2d-style uniform bound, BN defaults).
    fan_in = C_IN * KH * KW
    bound = 1.0 / (fan_in ** 0.5)
    conv_w = jax.random.uniform(k_w, (1, C_IN, KH, KW), jnp.float32,
                                minval=-bound, maxval=bound)
    conv_b = jax.random.uniform(k_b, (1,), jnp.float32,
                                minval=-bound, maxval=bound)
    gamma = jnp.ones((1,), jnp.float32)
    beta = jnp.zeros((1,), jnp.float32)

    out1 = jax.block_until_ready(conv_bn_forward(x1, conv_w, conv_b, gamma, beta))
    outb = jax.block_until_ready(conv_bn_forward(xb, conv_w, conv_b, gamma, beta))

    ref1 = reference(x1, conv_w, conv_b, gamma, beta)
    refb = reference(xb, conv_w, conv_b, gamma, beta)

    assert out1.shape == (1, 1, H_OUT, W_OUT)
    assert outb.shape == (256, 1, H_OUT, W_OUT)
    assert jnp.allclose(out1, ref1, atol=2e-5, rtol=2e-5), (
        f"max err {jnp.max(jnp.abs(out1 - ref1))}")
    assert jnp.allclose(outb, refb, atol=2e-5, rtol=2e-5), (
        f"max err {jnp.max(jnp.abs(outb - refb))}")

    print("KERNEL_OK")
</pallas_src>

<mosaic_0001>
module attributes {stable_mosaic.version = 11 : i64} {
  func.func @conv_bn_kernel(%arg0: i32, %arg1: memref<1xf32, #tpu.memory_space<smem>>, %arg2: memref<1xf32, #tpu.memory_space<smem>>, %arg3: memref<1xf32, #tpu.memory_space<smem>>, %arg4: memref<1x108xf32, #tpu.memory_space<vmem>>, %arg5: memref<108x16xf32, #tpu.memory_space<vmem>>, %arg6: memref<1x16xf32, #tpu.memory_space<vmem>>) attributes {dimension_semantics = [#tpu.dimension_semantics<parallel>], iteration_bounds = array<i64: 1>, scalar_prefetch = 0 : i64, scratch_operands = 0 : i64, tpu.core_type = #tpu.core_type<tc>, window_params = [{transform_indices = @transform_0, window_bounds = array<i64: 1>}, {transform_indices = @transform_1, window_bounds = array<i64: 1>}, {transform_indices = @transform_2, window_bounds = array<i64: 1>}, {transform_indices = @transform_3, window_bounds = array<i64: 1, 108>}, {pipeline_mode = #tpu.pipeline_mode<synchronous>, transform_indices = @transform_4, window_bounds = array<i64: 108, 16>}, {transform_indices = @transform_5, window_bounds = array<i64: 1, 16>}]} {
    %c0 = arith.constant 0 : index
    %c0_0 = arith.constant 0 : index
    %0 = vector.load %arg4[%c0, %c0_0] : memref<1x108xf32, #tpu.memory_space<vmem>>, vector<1x108xf32>
    %c0_1 = arith.constant 0 : index
    %c0_2 = arith.constant 0 : index
    %1 = vector.load %arg5[%c0_1, %c0_2] : memref<108x16xf32, #tpu.memory_space<vmem>>, vector<108x16xf32>
    %cst = arith.constant dense<0.000000e+00> : vector<1x16xf32>
    %2 = tpu.matmul %0, %1, %cst {dimension_numbers = #tpu.dot_dimension_numbers<[1], [0], [0], [1], [0, 0, 1, 1], [], []>, precision = #tpu.contract_precision<fp32>} : vector<1x108xf32>, vector<108x16xf32>, vector<1x16xf32> -> vector<1x16xf32>
    %c0_3 = arith.constant 0 : index
    %3 = memref.load %arg1[%c0_3] : memref<1xf32, #tpu.memory_space<smem>>
    %4 = vector.broadcast %3 : f32 to vector<1x16xf32>
    %5 = arith.addf %2, %4 : vector<1x16xf32>
    %cst_4 = arith.constant dense<0.000000e+00> : vector<1xf32>
    %6 = vector.multi_reduction <add>, %5, %cst_4 [1] : vector<1x16xf32> to vector<1xf32>
    %7 = vector.shape_cast %6 : vector<1xf32> to vector<1x1xf32>
    %cst_5 = arith.constant 6.250000e-02 : f32
    %8 = vector.broadcast %cst_5 : f32 to vector<1x1xf32>
    %9 = arith.mulf %7, %8 : vector<1x1xf32>
    %10 = vector.broadcast %9 : vector<1x1xf32> to vector<1x16xf32>
    %11 = arith.subf %5, %10 : vector<1x16xf32>
    %12 = arith.mulf %11, %11 : vector<1x16xf32>
    %cst_6 = arith.constant dense<0.000000e+00> : vector<1xf32>
    %13 = vector.multi_reduction <add>, %12, %cst_6 [1] : vector<1x16xf32> to vector<1xf32>
    %14 = vector.shape_cast %13 : vector<1xf32> to vector<1x1xf32>
    %cst_7 = arith.constant 6.250000e-02 : f32
    %15 = vector.broadcast %cst_7 : f32 to vector<1x1xf32>
    %16 = arith.mulf %14, %15 : vector<1x1xf32>
    %c0_8 = arith.constant 0 : index
    %17 = memref.load %arg2[%c0_8] : memref<1xf32, #tpu.memory_space<smem>>
    %18 = vector.broadcast %17 : f32 to vector<1x16xf32>
    %19 = arith.mulf %18, %11 : vector<1x16xf32>
    %cst_9 = arith.constant 9.99999974E-6 : f32
    %20 = vector.broadcast %cst_9 : f32 to vector<1x1xf32>
    %21 = arith.addf %16, %20 : vector<1x1xf32>
    %22 = math.rsqrt %21 : vector<1x1xf32>
    %23 = vector.broadcast %22 : vector<1x1xf32> to vector<1x16xf32>
    %24 = arith.mulf %19, %23 : vector<1x16xf32>
    %c0_10 = arith.constant 0 : index
    %25 = memref.load %arg3[%c0_10] : memref<1xf32, #tpu.memory_space<smem>>
    %26 = vector.broadcast %25 : f32 to vector<1x16xf32>
    %27 = arith.addf %24, %26 : vector<1x16xf32>
    %c0_11 = arith.constant 0 : index
    %c0_12 = arith.constant 0 : index
    %28 = vector.load %arg6[%c0_11, %c0_12] : memref<1x16xf32, #tpu.memory_space<vmem>>, vector<1x16xf32>
    tpu.vector_store %arg6[%c0_11, %c0_12], %27 {strides = array<i32>} : memref<1x16xf32, #tpu.memory_space<vmem>>, vector<1x16xf32>,
    return
  }
  func.func @transform_0(%arg0: i32) -> i32 {
    %c0_i32 = arith.constant 0 : i32
    %c0_i32_0 = arith.constant 0 : i32
    return %c0_i32 : i32
  }
  func.func @transform_1(%arg0: i32) -> i32 {
    %c0_i32 = arith.constant 0 : i32
    %c0_i32_0 = arith.constant 0 : i32
    return %c0_i32 : i32
  }
  func.func @transform_2(%arg0: i32) -> i32 {
    %c0_i32 = arith.constant 0 : i32
    %c0_i32_0 = arith.constant 0 : i32
    return %c0_i32 : i32
  }
  func.func @transform_3(%arg0: i32) -> (i32, i32) {
    %c0_i32 = arith.constant 0 : i32
    %c0_i32_0 = arith.constant 0 : i32
    return %arg0, %c0_i32 : i32, i32
  }
  func.func @transform_4(%arg0: i32) -> (i32, i32) {
    %c0_i32 = arith.constant 0 : i32
    %c0_i32_0 = arith.constant 0 : i32
    %c0_i32_1 = arith.constant 0 : i32
    return %c0_i32, %c0_i32_0 : i32, i32
  }
  func.func @transform_5(%arg0: i32) -> (i32, i32) {
    %c0_i32 = arith.constant 0 : i32
    %c0_i32_0 = arith.constant 0 : i32
    return %arg0, %c0_i32 : i32, i32
  }
}

</mosaic_0001>

<bundles_post_ra>
// kernel: conv_bn_forward.1
= control target key start
LH: loop header
LB: loop body
LE: loop exit
PB: predicated region body
PF: predicated region fallthrough
CT: control target
= control target key end

     0   :  { %v1105_v0 = vmov 0.0|0.0   ;;  %vm1106_vm0 = vmmov 0   ;;  %v1107_v8 = vmov 0.0   ;;  %vm40_vm1 = vcmask 883712   ;;  %s1384_s4 = inlined_call_operand.vmem [shape: f32[108,16], index: 4, kind: input, shape index: {}]   ;;  %s1385_s3 = inlined_call_operand.vmem [shape: f32[1,108], index: 3, kind: input, shape index: {}]   ;;  %s1386_s0 = inlined_call_operand.<no memory space> [shape: f32[1], index: 0, kind: input, shape index: {}]   ;;  %s1387_s1 = inlined_call_operand.<no memory space> [shape: f32[1], index: 1, kind: input, shape index: {}]   ;;  %s1388_s2 = inlined_call_operand.<no memory space> [shape: f32[1], index: 2, kind: input, shape index: {}]   ;;  %s1389_s5 = inlined_call_operand.vmem [shape: f32[1,16], index: 5, kind: output, shape index: {}]  }
   0x1   :  { %964 = vmatprep.subr.bf16.mxu1 %v1105_v0  ;;  %1027 = vmatprep.subr.bf16.mxu0 %v1105_v0  ;;  %v24_v1 = vld [vmem:[%s1384_s4] sm:$0xff]  ;;  %v25_v2 = vld [vmem:[%s1384_s4 + $0x8] sm:$0xff]  ;;  %v26_v3 = vld [vmem:[%s1384_s4 + $0x10] sm:$0xff]  ;;  %vm44_vm2 = vcmask 1043456   ;;  %vm663_vm3 = vcmask 122880  }
   0x2   :  { %v49_v4 = vand.u32 4294901760, %v24_v1  ;;  %v52_v5 = vand.u32 4294901760, %v25_v2  ;;  %v27_v6 = vld [vmem:[%s1384_s4 + $0x18] sm:$0xff]  ;;  %v55_v7 = vand.u32 4294901760, %v26_v3  ;;  %806 = vmatprep.mubr.msk.f32.mxu1 %vm1106_vm0, %v1107_v8  ;;  %899 = vmatprep.mubr.msk.f32.mxu0 %vm1106_vm0, %v1107_v8  ;;  %v28_v10 = vld [vmem:[%s1384_s4 + $0x20] sm:$0xff]  ;;  %v29_v11 = vld [vmem:[%s1384_s4 + $0x28] sm:$0xff] }
   0x3   :  { %v58_v9 = vand.u32 4294901760, %v27_v6  ;;  %v61_v14 = vand.u32 4294901760, %v28_v10  ;;  %v64_v15 = vand.u32 4294901760, %v29_v11  ;;  %v30_v16 = vld [vmem:[%s1384_s4 + $0x30] sm:$0xff]  ;;  %v31_v17 = vld [vmem:[%s1384_s4 + $0x38] sm:$0xff]  ;;  %v32_v23 = vld [vmem:[%s1384_s4 + $0x40] sm:$0xff] }
   0x4   :  { %v1162_v12 = vpack.c.bf16 %v52_v5, %v49_v4  ;;  %v23_v18 = vld [vmem:[%s1385_s3] sm:$0x1]  ;;  %v67_v20 = vand.u32 4294901760, %v30_v16  ;;  %v70_v21 = vand.u32 4294901760, %v31_v17  ;;  %v33_v24 = vld [vmem:[%s1384_s4 + $0x48] sm:$0xff]  ;;  %v1191_v25 = vsub.f32 %v24_v1, %v49_v4  ;;  %v1204_v31 = vld [vmem:[%s1384_s4 + $0x50] sm:$0xff] }
   0x5   :  { %v1166_v13 = vpack.c.bf16 %v58_v9, %v55_v7  ;;  %v1181_v19 = vpack.c.bf16 %v64_v15, %v61_v14  ;;  %v42_v22 = vsel %vm40_vm1, %v23_v18, 0  ;;  %v1195_v27 = vsub.f32 %v25_v2, %v52_v5  ;;  %v1209_v32 = vld [vmem:[%s1384_s4 + $0x58] sm:$0xff]  ;;  %v37_v33 = vld [vmem:[%s1384_s4 + $0x68] sm:$0xf]  ;;  %v1225_v38 = vld [vmem:[%s1384_s4 + $0x60] sm:$0xff] }
   0x6   :  { %966 = vmatpush3.bf16.msra.mxu1 %v1162_v12  ;;  %1029 = vmatpush3.bf16.msra.mxu0 %v1162_v12  ;;  %v1193_v26 = vand.u32 4294901760, %v42_v22  ;;  %v1199_v28 = vpack.c.bf16 %v70_v21, %v67_v20  ;;  %v73_v29 = vand.u32 4294901760, %v32_v23  ;;  %v76_v30 = vand.u32 4294901760, %v33_v24 }
   0x7   :  { %967 = vmatprep.subr.bf16.mxu1 %v1105_v0  ;;  %1030 = vmatprep.subr.bf16.mxu0 %v1105_v0  ;;  %v1216_v34 = vsub.f32 %v26_v3, %v55_v7  ;;  %v1218_v35 = vsub.f32 %v27_v6, %v58_v9  ;;  %v79_v36 = vand.u32 4294901760, %v1204_v31  ;;  %v82_v37 = vand.u32 4294901760, %v1209_v32 }
   0x8   :  { %v1228_v39 = vsub.f32 %v42_v22, %v1193_v26  ;;  %v1232_v40 = vpack.c.bf16 %v76_v30, %v73_v29  ;;  %v1234_v41 = vsel %vm44_vm2, %v37_v33, 0  ;;  %v140_v42 = vand.u32 4294901760, %v1191_v25 }
   0x9   :  { %v147_v43 = vand.u32 4294901760, %v1195_v27  ;;  %v1240_v44 = vsub.f32 %v28_v10, %v61_v14  ;;  %v1242_v45 = vsub.f32 %v29_v11, %v64_v15  ;;  %v85_v46 = vand.u32 4294901760, %v1225_v38 }
   0xa   :  { %969 = vmatpush3.bf16.msra.mxu1 %v1166_v13  ;;  %1032 = vmatpush3.bf16.msra.mxu0 %v1166_v13  ;;  %v88_v47 = vand.u32 4294901760, %v1234_v41  ;;  %v129_v48 = vand.u32 4294901760, %v1228_v39  ;;  %v154_v49 = vand.u32 4294901760, %v1216_v34  ;;  %v161_v50 = vand.u32 4294901760, %v1218_v35 }
   0xb   :  { %970 = vmatprep.subr.bf16.mxu1 %v1105_v0  ;;  %1033 = vmatprep.subr.bf16.mxu0 %v1105_v0  ;;  %v1251_v51 = vpack.c.bf16 %v82_v37, %v79_v36  ;;  %v141_v52 = vsub.f32 %v1191_v25, %v140_v42  ;;  %v148_v53 = vsub.f32 %v1195_v27, %v147_v43  ;;  %v168_v62 = vand.u32 4294901760, %v1240_v44 }
   0xc   :  { %v1257_v54 = vsub.f32 %v30_v16, %v67_v20  ;;  %v1259_v55 = vsub.f32 %v31_v17, %v70_v21  ;;  %v1261_v56 = vpack.c.bf16 %v88_v47, %v85_v46  ;;  %v130_v57 = vsub.f32 %v1228_v39, %v129_v48 }
   0xd   :  { %v155_v58 = vsub.f32 %v1216_v34, %v154_v49  ;;  %v162_v59 = vsub.f32 %v1218_v35, %v161_v50  ;;  %v142_v60 = vand.u32 4294901760, %v141_v52  ;;  %v149_v61 = vand.u32 4294901760, %v148_v53 }
   0xe   :  { %972 = vmatpush3.bf16.msra.mxu1 %v1181_v19  ;;  %1035 = vmatpush3.bf16.msra.mxu0 %v1181_v19  ;;  %v175_v63 = vand.u32 4294901760, %v1242_v45  ;;  %v1272_v1 = vsub.f32 %v32_v23, %v73_v29  ;;  %v1274_v2 = vsub.f32 %v33_v24, %v76_v30  ;;  %v1049_v3 = vpack.c.bf16 %v147_v43, %v140_v42 }
   0xf   :  { %973 = vmatprep.subr.bf16.mxu1 %v1105_v0  ;;  %1036 = vmatprep.subr.bf16.mxu0 %v1105_v0  ;;  %v131_v4 = vand.u32 4294901760, %v130_v57  ;;  %v156_v5 = vand.u32 4294901760, %v155_v58  ;;  %v163_v6 = vand.u32 4294901760, %v162_v59  ;;  %v182_v7 = vand.u32 4294901760, %v1257_v54 }
  0x10   :  { %v986_v9 = vpack.c.bf16 %v149_v61, %v142_v60  ;;  %v169_v10 = vsub.f32 %v1240_v44, %v168_v62  ;;  %v176_v11 = vsub.f32 %v1242_v45, %v175_v63  ;;  %v189_v14 = vand.u32 4294901760, %v1259_v55 }
  0x11   :  { %v1285_v15 = vsub.f32 %v1204_v31, %v79_v36  ;;  %v1288_v16 = vsub.f32 %v1209_v32, %v82_v37  ;;  %v989_v17 = vpack.c.bf16 %v163_v6, %v156_v5  ;;  %v1052_v18 = vpack.c.bf16 %v161_v50, %v154_v49 }
  0x12   :  { %975 = vmatpush3.bf16.msra.mxu1 %v1199_v28  ;;  %1038 = vmatpush3.bf16.msra.mxu0 %v1199_v28  ;;  %v183_v20 = vsub.f32 %v1257_v54, %v182_v7  ;;  %v196_v21 = vand.u32 4294901760, %v1272_v1  ;;  %v170_v22 = vand.u32 4294901760, %v169_v10  ;;  %v177_v23 = vand.u32 4294901760, %v176_v11 }
  0x13   :  { %976 = vmatprep.subr.bf16.mxu1 %v1105_v0  ;;  %1039 = vmatprep.subr.bf16.mxu0 %v1105_v0  ;;  %v190_v24 = vsub.f32 %v1259_v55, %v189_v14  ;;  %v203_v29 = vand.u32 4294901760, %v1274_v2  ;;  %v1297_v30 = vsub.f32 %v1225_v38, %v85_v46  ;;  %v1300_v31 = vsub.f32 %v1234_v41, %v88_v47 }
  0x14   :  { %v1055_v32 = vpack.c.bf16 %v175_v63, %v168_v62  ;;  %v184_v33 = vand.u32 4294901760, %v183_v20  ;;  %v197_v36 = vsub.f32 %v1272_v1, %v196_v21  ;;  %v210_v37 = vand.u32 4294901760, %v1285_v15 }
  0x15   :  { %v992_v42 = vpack.c.bf16 %v177_v23, %v170_v22  ;;  %v191_v38 = vand.u32 4294901760, %v190_v24  ;;  %v204_v43 = vsub.f32 %v1274_v2, %v203_v29  ;;  %v217_v41 = vand.u32 4294901760, %v1288_v16 }
  0x16   :  { %978 = vmatpush3.bf16.msra.mxu1 %v1232_v40  ;;  %1041 = vmatpush3.bf16.msra.mxu0 %v1232_v40  ;;  %v1058_v46 = vpack.c.bf16 %v189_v14, %v182_v7  ;;  %v198_v47 = vand.u32 4294901760, %v197_v36  ;;  %v224_v49 = vand.u32 4294901760, %v1297_v30  ;;  %v231_v57 = vand.u32 4294901760, %v1300_v31 }
  0x17   :  { %979 = vmatprep.subr.bf16.mxu1 %v1105_v0  ;;  %1042 = vmatprep.subr.bf16.mxu0 %v1105_v0  ;;  %v995_v50 = vpack.c.bf16 %v191_v38, %v184_v33  ;;  %v205_v52 = vand.u32 4294901760, %v204_v43  ;;  %v218_v53 = vsub.f32 %v1288_v16, %v217_v41  ;;  %v1061_v58 = vpack.c.bf16 %v203_v29, %v196_v21 }
  0x18   :  { %v225_v62 = vsub.f32 %v1297_v30, %v224_v49  ;;  %v232_v63 = vsub.f32 %v1300_v31, %v231_v57  ;;  %v1007_v10 = vpack.c.bf16 %v1195_v27, %v1191_v25  ;;  %v1010_v11 = vpack.c.bf16 %v1218_v35, %v1216_v34 }
  0x19   :  { %v998_v60 = vpack.c.bf16 %v205_v52, %v198_v47  ;;  %v219_v61 = vand.u32 4294901760, %v218_v53  ;;  %v1013_v25 = vpack.c.bf16 %v1242_v45, %v1240_v44  ;;  %v39_v27 = vstv %s1386_s0 }
  0x1a   :  { %981 = vmatpush3.bf16.msra.mxu1 %v1251_v51  ;;  %1044 = vmatpush3.bf16.msra.mxu0 %v1251_v51  ;;  %v226_v5 = vand.u32 4294901760, %v225_v62  ;;  %v233_v6 = vand.u32 4294901760, %v232_v63  ;;  %v675_v14 = vstv %s1387_s1 }
  0x1b   :  { %982 = vmatprep.subr.bf16.mxu1 %v1105_v0  ;;  %1045 = vmatprep.subr.bf16.mxu0 %v1105_v0 }
  0x1c   :  { %v1004_v7 = vpack.c.bf16 %v233_v6, %v226_v5 }
  0x1e   :  { %984 = vmatpush3.bf16.msra.mxu1 %v1261_v56  ;;  %1047 = vmatpush3.bf16.msra.mxu0 %v1261_v56 }
  0x1f   :  { %985 = vmatprep.subr.bf16.mxu1 %v1105_v0  ;;  %1048 = vmatprep.subr.bf16.mxu0 %v1105_v0 }
  0x21   :  { %807 = vmatmul.mubr.f32.vlgmr.msra.gmra.mrb[0].mxu1 %v131_v4  ;;  %900 = vmatmul.mubr.f32.vlgmr.msra.gmra.mrb[0].mxu0 %v129_v48  ;;  %v211_v48 = vsub.f32 %v1285_v15, %v210_v37  ;;  %v1064_v4 = vpack.c.bf16 %v217_v41, %v210_v37 }
  0x22   :  { %987 = vmatpush3.bf16.msra.mxu1 %v986_v9  ;;  %1050 = vmatpush3.bf16.msra.mxu0 %v1049_v3  ;;  %v1067_v9 = vpack.c.bf16 %v231_v57, %v224_v49 }
  0x23   :  { %988 = vmatprep.subr.bf16.mxu1 %v1105_v0  ;;  %1051 = vmatprep.subr.bf16.mxu0 %v1105_v0  ;;  %v212_v59 = vand.u32 4294901760, %v211_v48 }
  0x24   :  { %837 = vmatprep.mubr.msk.f32.mxu1 %vm1106_vm0, %v1107_v8  ;;  %930 = vmatprep.mubr.msk.f32.mxu0 %vm1106_vm0, %v1107_v8 }
  0x25   :  { %v1001_v3 = vpack.c.bf16 %v219_v61, %v212_v59 }
  0x26   :  { %990 = vmatpush3.bf16.msra.mxu1 %v989_v17  ;;  %1053 = vmatpush3.bf16.msra.mxu0 %v1052_v18  ;;  %v681_v17 = vstv %s1388_s2 }
  0x27   :  { %991 = vmatprep.subr.bf16.mxu1 %v1105_v0  ;;  %1054 = vmatprep.subr.bf16.mxu0 %v1105_v0 }
  0x2a   :  { %993 = vmatpush3.bf16.msra.mxu1 %v992_v42  ;;  %1056 = vmatpush3.bf16.msra.mxu0 %v1055_v32 }
  0x2b   :  { %994 = vmatprep.subr.bf16.mxu1 %v1105_v0  ;;  %1057 = vmatprep.subr.bf16.mxu0 %v1105_v0 }
  0x2e   :  { %996 = vmatpush3.bf16.msra.mxu1 %v995_v50  ;;  %1059 = vmatpush3.bf16.msra.mxu0 %v1058_v46 }
  0x2f   :  { %997 = vmatprep.subr.bf16.mxu1 %v1105_v0  ;;  %1060 = vmatprep.subr.bf16.mxu0 %v1105_v0 }
  0x32   :  { %999 = vmatpush3.bf16.msra.mxu1 %v998_v60  ;;  %1062 = vmatpush3.bf16.msra.mxu0 %v1061_v58 }
  0x33   :  { %1000 = vmatprep.subr.bf16.mxu1 %v1105_v0  ;;  %1063 = vmatprep.subr.bf16.mxu0 %v1105_v0 }
  0x36   :  { %1002 = vmatpush3.bf16.msra.mxu1 %v1001_v3  ;;  %1065 = vmatpush3.bf16.msra.mxu0 %v1064_v4 }
  0x37   :  { %1003 = vmatprep.subr.bf16.mxu1 %v1105_v0  ;;  %1066 = vmatprep.subr.bf16.mxu0 %v1105_v0 }
  0x3a   :  { %1005 = vmatpush3.bf16.msra.mxu1 %v1004_v7  ;;  %1068 = vmatpush3.bf16.msra.mxu0 %v1067_v9 }
  0x3b   :  { %1006 = vmatprep.subr.bf16.mxu1 %v1105_v0  ;;  %1069 = vmatprep.subr.bf16.mxu0 %v1105_v0 }
  0x3d   :  { %838 = vmatmul.mubr.f32.vlgmr.msra.gmra.mrb[0].mxu1 %v1193_v26  ;;  %931 = vmatmul.mubr.f32.vlgmr.msra.gmra.mrb[0].mxu0 %v1193_v26 }
  0x3e   :  { %1008 = vmatpush3.bf16.msra.mxu1 %v1007_v10  ;;  %1071 = vmatpush3.bf16.msra.mxu0 %v1162_v12  ;;  %v1016_v12 = vpack.c.bf16 %v1259_v55, %v1257_v54 }
  0x3f   :  { %1009 = vmatprep.subr.bf16.mxu1 %v1105_v0  ;;  %1072 = vmatprep.subr.bf16.mxu0 %v1105_v0 }
  0x40   :  { %868 = vmatprep.mubr.msk.f32.mxu1 %vm1106_vm0, %v1107_v8  ;;  %961 = vmatprep.mubr.msk.f32.mxu0 %vm1106_vm0, %v1107_v8  ;;  %v1019_v8 = vpack.c.bf16 %v1274_v2, %v1272_v1 }
  0x42   :  { %1011 = vmatpush3.bf16.msra.mxu1 %v1010_v11  ;;  %1074 = vmatpush3.bf16.msra.mxu0 %v1166_v13  ;;  %v1022_v13 = vpack.c.bf16 %v1288_v16, %v1285_v15 }
  0x43   :  { %1012 = vmatprep.subr.bf16.mxu1 %v1105_v0  ;;  %1075 = vmatprep.subr.bf16.mxu0 %v1105_v0 }
  0x46   :  { %1014 = vmatpush3.bf16.msra.mxu1 %v1013_v25  ;;  %1077 = vmatpush3.bf16.msra.mxu0 %v1181_v19  ;;  %v1025_v19 = vpack.c.bf16 %v1300_v31, %v1297_v30 }
  0x47   :  { %1015 = vmatprep.subr.bf16.mxu1 %v1105_v0  ;;  %1078 = vmatprep.subr.bf16.mxu0 %v1105_v0 }
  0x4a   :  { %1017 = vmatpush3.bf16.msra.mxu1 %v1016_v12  ;;  %1080 = vmatpush3.bf16.msra.mxu0 %v1199_v28 }
  0x4b   :  { %1018 = vmatprep.subr.bf16.mxu1 %v1105_v0  ;;  %1081 = vmatprep.subr.bf16.mxu0 %v1105_v0 }
  0x4e   :  { %1020 = vmatpush3.bf16.msra.mxu1 %v1019_v8  ;;  %1083 = vmatpush3.bf16.msra.mxu0 %v1232_v40 }
  0x4f   :  { %1021 = vmatprep.subr.bf16.mxu1 %v1105_v0  ;;  %1084 = vmatprep.subr.bf16.mxu0 %v1105_v0 }
  0x52   :  { %1023 = vmatpush3.bf16.msra.mxu1 %v1022_v13  ;;  %1086 = vmatpush3.bf16.msra.mxu0 %v1251_v51 }
  0x53   :  { %1024 = vmatprep.subr.bf16.mxu1 %v1105_v0  ;;  %1087 = vmatprep.subr.bf16.mxu0 %v1105_v0 }
  0x56   :  { %1026 = vmatpush3.bf16.msra.mxu1 %v1025_v19  ;;  %1089 = vmatpush3.bf16.msra.mxu0 %v1261_v56 }
  0x59   :  { %869 = vmatmul.mubr.f32.vlgmr.msra.gmra.mrb[0].mxu1 %v1228_v39  ;;  %962 = vmatmul.mubr.f32.vlgmr.msra.gmra.mrb[0].mxu0 %v1193_v26 }
 0x12c   :  { %v374_v28 = vpop.f32.mrb[0].mxu1  ;;  %v659_v34 = vpop.f32.mrb[0].mxu0 }
 0x12d   :  { %v1090_v35 = vadd.f32 %v374_v28, %v39_v27  ;;  %v870_v40 = vpop.f32.mrb[1].mxu1  ;;  %v963_v44 = vpop.f32.mrb[1].mxu0 }
 0x12f   :  { %v1091_v45 = vadd.f32 %v1090_v35, %v659_v34 }
 0x131   :  { %v664_v0 = vsel %vm663_vm3, %v1091_v45, 0.0 }
 0x132   :  { %665 = vadd.xlane.f32.xlu0 %v664_v0 }
 0x1bf   :  { %v666_v51 = vpop.xlane.xlu0 %665 }
 0x1c0   :  { %v667_v54 = vmul.f32 0.0625, %v666_v51 }
 0x1c2   :  { %v668_v55 = vsub.f32 %v1091_v45, %v667_v54 }
 0x1c4   :  { %v669_v39 = vmul.f32 %v668_v55, %v668_v55  ;;  %v676_v15 = vmul.f32 %v675_v14, %v668_v55 }
 0x1c6   :  { %v670_v26 = vsel %vm663_vm3, %v669_v39, 0.0 }
 0x1c7   :  { %671 = vadd.xlane.f32.xlu0 %v670_v26 }
 0x254   :  { %v672_v56 = vpop.xlane.xlu0 %671 }
 0x255   :  { %v673_v1 = vmul.f32 0.0625, %v672_v56 }
 0x257   :  { %v677_v2 = vadd.f32 1e-05, %v673_v1 }
 0x259   :  { %1103 = vrsqrt.f32 %v677_v2 }
 0x263   :  { %v1104_v16 = vpop.eup %1103 }
 0x264   :  { %v679_v18 = vmul.f32 %v1104_v16, %v676_v15 }
 0x266   :  { %v682_v20 = vadd.f32 %v681_v17, %v679_v18 }
 0x268   :  { %683 = vst.msk [vmem:[%s1389_s5] sm:$0x1] %vm663_vm3, %v682_v20 }

</bundles_post_ra>
